<compile_context>
chip_gen: v5e
topology: v5e:2x2
jax: 0.10.0
libtpu: 0.0.40
codegen_flags: <defaults>
</compile_context>

<pallas_src>
import functools

import jax
import jax.numpy as jnp
from jax import lax
from jax.experimental import pallas as pl
from jax.experimental.pallas import tpu as pltpu


def _agent_loss_kernel(labels_ref, feat_ref, agents_ref, out_ref, acc_ref, *,
                       bs, gather_dtype):
    p = pl.program_id(0)           # parallel split (megacore) axis
    i = pl.program_id(1)           # sequential batch-tile axis within split
    steps = pl.num_programs(1)

    @pl.when(i == 0)
    def _init():
        acc_ref[...] = jnp.zeros_like(acc_ref)

    tile_bs, dim = feat_ref.shape
    n_class = agents_ref.shape[0]

    # One-hot gather on the MXU: (tile_bs, n_class) @ (n_class, dim).
    class_ids = lax.broadcasted_iota(jnp.int32, (tile_bs, n_class), 1)
    onehot = (labels_ref[...] == class_ids).astype(gather_dtype)
    gathered = jnp.dot(onehot, agents_ref[...].astype(gather_dtype),
                       preferred_element_type=jnp.float32)

    # Elementwise product in f32.
    prod = feat_ref[...].astype(jnp.float32) * gathered

    # Mask rows whose *global* index is >= bs (tail of the last real tile and
    # any phantom tile of an uneven split).  Applied after the multiply so
    # undefined implicit-padding contents cannot poison the sum.
    base = (p * steps + i) * tile_bs
    row_ids = lax.broadcasted_iota(jnp.int32, (tile_bs, 1), 0) + base
    prod = jnp.where(row_ids < bs, prod, 0.0)

    # 8-row-stride accumulation into an (8, dim) f32 accumulator; the full
    # sublane+lane reduction is deferred to the finalize step.
    if tile_bs % 8 == 0:
        acc_ref[...] += prod.reshape(tile_bs // 8, 8, dim).sum(axis=0)
    else:
        acc_ref[0:1, :] = acc_ref[0:1, :] + jnp.sum(prod, axis=0, keepdims=True)

    @pl.when(i == steps - 1)
    def _finalize():
        total = jnp.sum(acc_ref[...])
        out_ref[...] = jnp.full(out_ref.shape, total, dtype=out_ref.dtype)


def agent_loss(features, agents, labels, *, max_tile_bs=1024,
               num_parallel_splits=2, gather_in_bf16=False):
    """features: (BS, dim), agents: (n_class, dim), labels: (BS,) int."""
    bs, dim = features.shape
    n_class, dim_a = agents.shape
    assert dim == dim_a, (features.shape, agents.shape)

    labels = labels.astype(jnp.int32).reshape(bs, 1)

    # Batch tiling: full batch if small, otherwise fixed tiles (1024 is a
    # multiple of 8).  No wrapper-side padding of features.
    tile_bs = bs if bs <= max_tile_bs else max_tile_bs
    num_tiles = pl.cdiv(bs, tile_bs)

    # Split the batch-tile loop across TensorCores (v7x: 2 TCs/chip).  On
    # 1-TC chips the extra axis is just an outer sequential loop.
    n_split = max(1, min(num_parallel_splits, num_tiles))
    steps = pl.cdiv(num_tiles, n_split)

    # Clamp block indices; phantom tiles (uneven split) re-read the last real
    # tile and are fully masked inside the kernel.
    def tile_index(p, i):
        return jnp.minimum(p * steps + i, num_tiles - 1)

    gather_dtype = (jnp.bfloat16
                    if (gather_in_bf16 and agents.dtype == jnp.float32)
                    else agents.dtype)

    feat_buffers = 3 if steps >= 3 else 2

    # Explicit VMEM budget: resident agents + feature pipeline buffers +
    # labels tiles + accumulator + output blocks, with ~25% headroom.
    lane = 128
    dim_p = pl.cdiv(dim, lane) * lane
    feat_tile_bytes = tile_bs * dim_p * features.dtype.itemsize
    labels_tile_bytes = tile_bs * lane * 4          # (tile_bs, 1) i32, lane-padded
    agents_bytes = n_class * dim_p * agents.dtype.itemsize
    acc_bytes = 8 * dim_p * 4
    out_bytes = 2 * 8 * lane * 4
    need = (agents_bytes + feat_buffers * feat_tile_bytes +
            2 * labels_tile_bytes + acc_bytes + out_bytes)
    vmem_limit = int(min(max(need * 1.25 + (4 << 20), 32 << 20), 100 << 20))

    kernel = functools.partial(_agent_loss_kernel, bs=bs,
                               gather_dtype=gather_dtype)

    out = pl.pallas_call(
        kernel,
        out_shape=jax.ShapeDtypeStruct((n_split, 8, 128), jnp.float32),
        grid_spec=pltpu.PrefetchScalarGridSpec(
            num_scalar_prefetch=0,
            grid=(n_split, steps),
            in_specs=[
                # labels tile
                pl.BlockSpec((tile_bs, 1), lambda p, i: (tile_index(p, i), 0)),
                # features tile, deeper pipelining on the memory-bound stream
                pl.BlockSpec((tile_bs, dim), lambda p, i: (tile_index(p, i), 0),
                             pipeline_mode=pl.Buffered(feat_buffers)),
                # agents: untiled, VMEM-resident, single-buffered
                pl.BlockSpec(memory_space=pltpu.MemorySpace.VMEM),
            ],
            out_specs=pl.BlockSpec((1, 8, 128), lambda p, i: (p, 0, 0)),
            scratch_shapes=[pltpu.VMEM((8, dim), jnp.float32)],
        ),
        compiler_params=pltpu.CompilerParams(
            dimension_semantics=("parallel", "arbitrary"),
            vmem_limit_bytes=vmem_limit),
    )(labels, features, agents)

    partials = out[:, 0, 0]                          # (n_split,) per-core sums
    return (1.0 - jnp.sum(partials) / bs).astype(jnp.float32)


if __name__ == "__main__":
    BS, DIM, N_CLASS = 8, 32, 4

    key = jax.random.PRNGKey(0)
    kf, ka, kl = jax.random.split(key, 3)
    features = jax.random.normal(kf, (BS, DIM), dtype=jnp.float32)
    agents = jax.random.normal(ka, (N_CLASS, DIM), dtype=jnp.float32)
    labels = jax.random.randint(kl, (BS,), 0, N_CLASS, dtype=jnp.int32)

    loss = agent_loss(features, agents, labels)
    jax.block_until_ready(loss)

    # Pure-JAX reference check.
    ref = 1.0 - jnp.mean(jnp.sum(features * agents[labels], axis=1))
    assert jnp.allclose(loss, ref, rtol=1e-5, atol=1e-5), (loss, ref)

    print("KERNEL_OK")
</pallas_src>

<mosaic_0001>
module attributes {stable_mosaic.version = 11 : i64} {
  func.func @_agent_loss_kernel(%arg0: i32, %arg1: i32, %arg2: memref<8x1xi32, #tpu.memory_space<vmem>>, %arg3: memref<8x32xf32, #tpu.memory_space<vmem>>, %arg4: memref<4x32xf32, #tpu.memory_space<vmem>>, %arg5: memref<1x8x128xf32, #tpu.memory_space<vmem>>, %arg6: memref<8x32xf32, #tpu.memory_space<vmem>>) attributes {dimension_semantics = [#tpu.dimension_semantics<parallel>, #tpu.dimension_semantics<arbitrary>], iteration_bounds = array<i64: 1, 1>, scalar_prefetch = 0 : i64, scratch_operands = 1 : i64, tpu.core_type = #tpu.core_type<tc>, window_params = [{transform_indices = @transform_0, window_bounds = array<i64: 8, 1>}, {pipeline_mode = #tpu.pipeline_mode<double_buffered>, transform_indices = @transform_1, window_bounds = array<i64: 8, 32>}, {pipeline_mode = #tpu.pipeline_mode<synchronous>, transform_indices = @transform_2, window_bounds = array<i64: 4, 32>}, {transform_indices = @transform_3, window_bounds = array<i64: 1, 8, 128>}]} {
    %c0_i32 = arith.constant 0 : i32
    %0 = arith.cmpi eq, %arg1, %c0_i32 : i32
    %1 = arith.extui %0 : i1 to i32
    %c0_i32_0 = arith.constant 0 : i32
    %2 = arith.cmpi ne, %1, %c0_i32_0 : i32
    scf.if %2 {
      %cst_15 = arith.constant 0.000000e+00 : f32
      %33 = vector.broadcast %cst_15 : f32 to vector<8x32xf32>
      %c0_16 = arith.constant 0 : index
      %c0_17 = arith.constant 0 : index
      %34 = vector.load %arg6[%c0_16, %c0_17] : memref<8x32xf32, #tpu.memory_space<vmem>>, vector<8x32xf32>
      tpu.vector_store %arg6[%c0_16, %c0_17], %33 {strides = array<i32>} : memref<8x32xf32, #tpu.memory_space<vmem>>, vector<8x32xf32>,
    } else {
    }
    %3 = tpu.iota {dimensions = array<i32: 1>} : vector<8x4xi32>
    %c0 = arith.constant 0 : index
    %c0_1 = arith.constant 0 : index
    %4 = vector.load %arg2[%c0, %c0_1] : memref<8x1xi32, #tpu.memory_space<vmem>>, vector<8x1xi32>
    %5 = vector.broadcast %4 : vector<8x1xi32> to vector<8x4xi32>
    %6 = arith.cmpi eq, %5, %3 : vector<8x4xi32>
    %7 = arith.extui %6 : vector<8x4xi1> to vector<8x4xi32>
    %8 = arith.sitofp %7 : vector<8x4xi32> to vector<8x4xf32>
    %c0_2 = arith.constant 0 : index
    %c0_3 = arith.constant 0 : index
    %9 = vector.load %arg4[%c0_2, %c0_3] : memref<4x32xf32, #tpu.memory_space<vmem>>, vector<4x32xf32>
    %cst = arith.constant dense<0.000000e+00> : vector<8x32xf32>
    %10 = tpu.matmul %8, %9, %cst {dimension_numbers = #tpu.dot_dimension_numbers<[1], [0], [0], [1], [0, 0, 1, 1], [], []>} : vector<8x4xf32>, vector<4x32xf32>, vector<8x32xf32> -> vector<8x32xf32>
    %c0_4 = arith.constant 0 : index
    %c0_5 = arith.constant 0 : index
    %11 = vector.load %arg3[%c0_4, %c0_5] : memref<8x32xf32, #tpu.memory_space<vmem>>, vector<8x32xf32>
    %12 = arith.mulf %11, %10 : vector<8x32xf32>
    %c1_i32 = arith.constant 1 : i32
    %13 = arith.muli %arg0, %c1_i32 : i32
    %14 = arith.addi %13, %arg1 : i32
    %c8_i32 = arith.constant 8 : i32
    %15 = arith.muli %14, %c8_i32 : i32
    %16 = tpu.iota {dimensions = array<i32: 0>} : vector<8x1xi32>
    %17 = vector.broadcast %15 : i32 to vector<8x1xi32>
    %18 = arith.addi %16, %17 : vector<8x1xi32>
    %c8_i32_6 = arith.constant 8 : i32
    %19 = vector.broadcast %c8_i32_6 : i32 to vector<8x1xi32>
    %20 = arith.cmpi slt, %18, %19 : vector<8x1xi32>
    %cst_7 = arith.constant 0.000000e+00 : f32
    %21 = vector.shape_cast %20 : vector<8x1xi1> to vector<8x1xi1>
    %22 = vector.broadcast %21 : vector<8x1xi1> to vector<8x32xi1>
    %23 = vector.broadcast %cst_7 : f32 to vector<8x32xf32>
    %24 = arith.select %22, %12, %23 : vector<8x32xi1>, vector<8x32xf32>
    %c0_8 = arith.constant 0 : index
    %c0_9 = arith.constant 0 : index
    %25 = vector.load %arg6[%c0_8, %c0_9] : memref<8x32xf32, #tpu.memory_space<vmem>>, vector<8x32xf32>
    %26 = vector.shape_cast %24 : vector<8x32xf32> to vector<1x8x32xf32>
    %cst_10 = arith.constant dense<0.000000e+00> : vector<8x32xf32>
    %27 = vector.multi_reduction <add>, %26, %cst_10 [0] : vector<1x8x32xf32> to vector<8x32xf32>
    %28 = arith.addf %25, %27 : vector<8x32xf32>
    %c0_11 = arith.constant 0 : index
    %c0_12 = arith.constant 0 : index
    %29 = vector.load %arg6[%c0_11, %c0_12] : memref<8x32xf32, #tpu.memory_space<vmem>>, vector<8x32xf32>
    tpu.vector_store %arg6[%c0_11, %c0_12], %28 {strides = array<i32>} : memref<8x32xf32, #tpu.memory_space<vmem>>, vector<8x32xf32>,
    %c0_i32_13 = arith.constant 0 : i32
    %30 = arith.cmpi eq, %arg1, %c0_i32_13 : i32
    %31 = arith.extui %30 : i1 to i32
    %c0_i32_14 = arith.constant 0 : i32
    %32 = arith.cmpi ne, %31, %c0_i32_14 : i32
    scf.if %32 {
      %c0_15 = arith.constant 0 : index
      %c0_16 = arith.constant 0 : index
      %33 = vector.load %arg6[%c0_15, %c0_16] : memref<8x32xf32, #tpu.memory_space<vmem>>, vector<8x32xf32>
      %34 = vector.shape_cast %33 : vector<8x32xf32> to vector<1x8x32xf32>
      %cst_17 = arith.constant dense<0.000000e+00> : vector<1xf32>
      %35 = vector.multi_reduction <add>, %34, %cst_17 [1, 2] : vector<1x8x32xf32> to vector<1xf32>
      %36 = vector.shape_cast %35 : vector<1xf32> to vector<1x1x1xf32>
      %37 = vector.extract %36[0, 0, 0] : f32 from vector<1x1x1xf32>
      %38 = vector.broadcast %37 : f32 to vector<1x8x128xf32>
      %c0_18 = arith.constant 0 : index
      %c0_19 = arith.constant 0 : index
      %c0_20 = arith.constant 0 : index
      %39 = vector.load %arg5[%c0_18, %c0_19, %c0_20] : memref<1x8x128xf32, #tpu.memory_space<vmem>>, vector<1x8x128xf32>
      tpu.vector_store %arg5[%c0_18, %c0_19, %c0_20], %38 {strides = array<i32>} : memref<1x8x128xf32, #tpu.memory_space<vmem>>, vector<1x8x128xf32>,
    } else {
    }
    return
  }
  func.func @transform_0(%arg0: i32, %arg1: i32) -> (i32, i32) {
    %c1_i32 = arith.constant 1 : i32
    %0 = arith.muli %arg0, %c1_i32 : i32
    %1 = arith.addi %0, %arg1 : i32
    %c0_i32 = arith.constant 0 : i32
    %2 = arith.minsi %1, %c0_i32 : i32
    %c0_i32_0 = arith.constant 0 : i32
    %c0_i32_1 = arith.constant 0 : i32
    return %2, %c0_i32_0 : i32, i32
  }
  func.func @transform_1(%arg0: i32, %arg1: i32) -> (i32, i32) {
    %c1_i32 = arith.constant 1 : i32
    %0 = arith.muli %arg0, %c1_i32 : i32
    %1 = arith.addi %0, %arg1 : i32
    %c0_i32 = arith.constant 0 : i32
    %2 = arith.minsi %1, %c0_i32 : i32
    %c0_i32_0 = arith.constant 0 : i32
    %c0_i32_1 = arith.constant 0 : i32
    return %2, %c0_i32_0 : i32, i32
  }
  func.func @transform_2(%arg0: i32, %arg1: i32) -> (i32, i32) {
    %c0_i32 = arith.constant 0 : i32
    %c0_i32_0 = arith.constant 0 : i32
    %c0_i32_1 = arith.constant 0 : i32
    return %c0_i32, %c0_i32_0 : i32, i32
  }
  func.func @transform_3(%arg0: i32, %arg1: i32) -> (i32, i32, i32) {
    %c0_i32 = arith.constant 0 : i32
    %c0_i32_0 = arith.constant 0 : i32
    %c0_i32_1 = arith.constant 0 : i32
    return %arg0, %c0_i32, %c0_i32_0 : i32, i32, i32
  }
}

</mosaic_0001>

<bundles_post_ra>
// kernel: tpu_custom_call.1
= control target key start
LH: loop header
LB: loop body
LE: loop exit
PB: predicated region body
PF: predicated region fallthrough
CT: control target
= control target key end

     0   :  { %8 = vsyncpa [#allocation4], 0  ;;  %s290_s0 = inlined_call_operand.vmem [shape: s32[8,1], index: 0, kind: input, shape index: {}]   ;;  %s291_s1 = inlined_call_operand.vmem [shape: f32[8,32], index: 1, kind: input, shape index: {}]   ;;  %s292_s2 = inlined_call_operand.hbm [shape: f32[4,32], index: 2, kind: input, shape index: {}]   ;;  %s293_s3 = inlined_call_operand.hbm [shape: f32[1,8,128], index: 3, kind: output, shape index: {}]  }
   0x1   :  { %9 = vsyncpa [#allocation5], 0  ;;  %s39_s14 = sshll.u32 %s292_s2, 4  ;;  %s251_s15 = smov [#allocation3]   ;;  %s40_s14 = int_to_ptr.hbm [resolvable:$true] %s39_s14 }
   0x2   :  { %s41_s16 = sshll.u32 %s251_s15, 4  ;;  %s42_s16 = int_to_ptr.vmem [resolvable:$true] %s41_s16 }
   0x3   :  { %44 = dma.hbm_to_vmem [thread:$0]  %s40_s14, 64, %s42_s16, [#allocation4]  }
   0x4   :  { %247 = dma.done.wait [#allocation4], 64  }
   0x5   :  { %248 = vsyncadd [#allocation4], 4294967232  ;;  %v252_v0 = vmov 0   ;;  %v91_v1 = vld [vmem:[%s290_s0] sm:$0xff]  ;;  %v98_v2 = vld [vmem:[#allocation3] sm:$0xf]  ;;  %v89_v4 = vlaneseq }
   0x6   :  { %198 = vset.pattern.permute.xlu0 %v252_v0  ;;  %vm103_vm0 = vcmask 1043456   ;;  %vm87_vm1 = vcmask 261120   ;;  %v253_v3 = vmov 0.0   ;;  %vm99_vm2 = vcmask 31744   ;;  %v127_v8 = vld [vmem:[%s291_s1] sm:$0xff]  ;;  %s254_s0 = smov [#allocation6]  }
   0x7   :  { %93 = vperm.xlu0 %198, %v91_v1   ;;  %190 = vmatpush.msk.msra.mxu0 %vm103_vm0, %v98_v2  ;;  %88 = vst.msk [vmem:[#allocation2] sm:$0xff] %vm87_vm1, %v253_v3  ;;  %v90_v5 = vand.u32 127, %v89_v4  ;;  %s165_s1 = sshll.u32 %s254_s0, 4  ;;  %s167_s22 = sshll.u32 %s293_s3, 4  ;;  %s166_s1 = int_to_ptr.vmem [resolvable:$true] %s165_s1  ;;  %s168_s22 = int_to_ptr.hbm [resolvable:$true] %s167_s22 }
   0xe   :  { %v139_v10 = vld [vmem:[#allocation2] sm:$0xff] }
  0x79   :  { %v94_v6 = vpop.permute.xlu0 %93 }
  0x7a   :  { %vm95_vm3 = vcmp.eq.s32.totalorder %v94_v6, %v90_v5 }
  0x7b   :  { %v189_v7 = vsel %vm95_vm3, 1.0, %v253_v3 }
  0x7c   :  { %191 = vmatmul.msk.f32.vlgmr.msra.gmra.mxu0 %vm99_vm2, %v189_v7 }
  0xf9   :  { %v124_v9 = vpop.f32.mrf.mxu0 }
  0xfa   :  { %v128_v11 = vmul.f32 %v127_v8, %v124_v9 }
  0xfc   :  { %v141_v12 = vadd.f32 %v139_v10, %v128_v11 }
  0xfe   :  { %143 = vst.msk [vmem:[#allocation2] sm:$0xff] %vm87_vm1, %v141_v12 }
 0x105   :  { %v147_v13 = vld [vmem:[#allocation2] sm:$0xff] }
 0x106   :  { %v148_v14 = vsel %vm87_vm1, %v147_v13, 0.0 }
 0x107   :  { %149 = vadd.xlane.f32.xlu0 %v148_v14 }
 0x17a   :  { %v150_v15 = vpop.xlane.xlu0 %149 }
 0x17b   :  { %v151_v16 = vrot.slane %v150_v15, 4 }
 0x17d   :  { %v152_v17 = vadd.f32 %v151_v16, %v150_v15 }
 0x17f   :  { %v153_v18 = vrot.slane %v152_v17, 2 }
 0x181   :  { %v154_v19 = vadd.f32 %v153_v18, %v152_v17 }
 0x183   :  { %v155_v20 = vrot.slane %v154_v19, 1 }
 0x185   :  { %v156_v21 = vadd.f32 %v155_v20, %v154_v19 }
 0x187   :  { %192 = vpush %v156_v21 }
 0x1b8   :  { %s193_s23 = spop %192 }
 0x1b9   :  { %v158_v22 = vstv %s193_s23 }
 0x1ba   :  { %159 = vst [vmem:[#allocation6] sm:$0xff] %v158_v22 }
 0x1bb   :  { %170 = dma.vmem_to_hbm [thread:$0]  %s166_s1, 128, %s168_s22, [#allocation5]  }
 0x1bc   :  { %249 = dma.done.wait [#allocation5], 128  }
 0x1bd   :  { %250 = vsyncadd [#allocation5], 4294967168 }
 0x1be   :  { %175 = vsyncpa [#allocation4], 1 }
 0x1bf   :  { %176 = vsyncpa [#allocation5], 1 }

</bundles_post_ra>
